<compile_context>
chip_gen: v6e
topology: v6e:2x2x1
jax: 0.10.0
libtpu: 0.0.40
codegen_flags: <defaults>
</compile_context>

<pallas_src>
import functools
import math

import jax
import jax.numpy as jnp
from jax import lax
from jax.experimental import pallas as pl
from jax.experimental.pallas import tpu as pltpu


_TARGET_TILE_BYTES = 4 * 1024 * 1024      # ~4 MiB per block per buffer
_VMEM_LIMIT_BYTES = 40 * 1024 * 1024      # explicit scoped-VMEM budget (see header)


def _sublane_multiple(dtype) -> int:
    itemsize = jnp.dtype(dtype).itemsize
    return {4: 8, 2: 16, 1: 32}.get(itemsize, 8)


def _choose_row_tile(total_rows: int, lane_w: int, dtype) -> int:
    """Row-tile: sublane-multiple, ~_TARGET_TILE_BYTES, preferring divisors of total_rows."""
    sub = _sublane_multiple(dtype)
    row_bytes = lane_w * jnp.dtype(dtype).itemsize
    target = max(sub, _TARGET_TILE_BYTES // max(row_bytes, 1))
    target = max(sub, (target // sub) * sub)
    if total_rows <= target:
        return total_rows                 # one comfortable block covers everything
    if total_rows % target == 0:
        return target
    # Prefer a nearby sublane-multiple divisor of total_rows: avoids one ragged,
    # masked-store block at the end of the grid.
    t = target
    while t >= max(sub, target // 2):
        if t % sub == 0 and total_rows % t == 0:
            return t
        t -= sub
    return target                         # fall back to cdiv padding


def _add_pe_kernel(*refs, seq_rows, row_tile, pos_scale, has_lane_scale):
    # x_ref / o_ref: (row_tile, lane_w) block. lane_ref (optional): (1, lane_w) f32,
    # constant block index -> fetched once, VMEM-resident.
    if has_lane_scale:
        x_ref, lane_ref, o_ref = refs
    else:
        x_ref, o_ref = refs
        lane_ref = None
    tr = x_ref.shape[0]
    row_start = pl.program_id(0) * row_tile
    rows = row_start + lax.broadcasted_iota(jnp.int32, (tr, 1), 0)
    within = rows % seq_rows                        # row index inside its batch slab
    enc = within.astype(jnp.float32) * pos_scale    # pos_scale = g / sqrt(d_model)
    if lane_ref is not None:
        enc = enc + lane_ref[...]                   # (1, lane_w) pre-scaled lane offsets
    # Encoding math kept in f32; only the final sum is cast back to x.dtype.
    # (For bf16/fp16 x this differs slightly from torch, which promotes to f32.)
    o_ref[...] = (x_ref[...].astype(jnp.float32) + enc).astype(o_ref.dtype)


def simple_positional_encoding(x: jax.Array, d_model: int | None = None,
                               max_len: int = 5000, *, donate_x: bool = False) -> jax.Array:
    """x: (B, S, D). Returns x + encoding[:S, :] with encoding[i, j] = i / sqrt(d_model).

    Set donate_x=True ONLY when x is actually donated (e.g. under
    jax.jit(..., donate_argnums=0)); then the kernel writes in place. Otherwise the
    default (no aliasing) avoids a defensive full copy of x.
    """
    b, s, d = x.shape
    if d_model is None:
        d_model = d
    if s > max_len:
        raise ValueError(f"seq_len {s} exceeds max_len {max_len}")
    inv_sqrt_d = 1.0 / math.sqrt(d_model)

    # Lane folding: pack g consecutive positions into one lcm(128, d)-wide row so
    # output stores are lane-dense full-width vst. Falls back to g=1 if s does not
    # fold cleanly (or the folded row would be excessively wide).
    g = math.lcm(128, d) // d
    if g > 1 and (s % g != 0 or g * d > 32768):
        g = 1
    seq_rows = s // g
    lane_w = g * d
    total_rows = b * seq_rows
    x_view = x.reshape(total_rows, lane_w)          # flatten (B, seq_rows) -> one row axis

    row_tile = _choose_row_tile(total_rows, lane_w, x.dtype)
    grid = (pl.cdiv(total_rows, row_tile),)

    kernel = functools.partial(
        _add_pe_kernel, seq_rows=seq_rows, row_tile=row_tile,
        pos_scale=g * inv_sqrt_d, has_lane_scale=(g > 1))

    in_specs = [pl.BlockSpec((row_tile, lane_w), lambda i: (i, 0))]
    operands = [x_view]
    if g > 1:
        # Per-lane offset (c // d) / sqrt(d_model), pre-scaled and pre-cast to f32.
        lane_scale = ((jnp.arange(lane_w, dtype=jnp.int32) // d).astype(jnp.float32)
                      * inv_sqrt_d).reshape(1, lane_w)
        in_specs.append(pl.BlockSpec((1, lane_w), lambda i: (0, 0)))
        operands.append(lane_scale)

    out_view = pl.pallas_call(
        kernel,
        out_shape=jax.ShapeDtypeStruct((total_rows, lane_w), x.dtype),
        grid=grid,
        in_specs=in_specs,
        out_specs=pl.BlockSpec((row_tile, lane_w), lambda i: (i, 0)),
        # Alias only when donation is guaranteed by the caller (see docstring).
        input_output_aliases={0: 0} if donate_x else {},
        compiler_params=pltpu.CompilerParams(
            dimension_semantics=("parallel",),
            vmem_limit_bytes=_VMEM_LIMIT_BYTES,
        ),
    )(*operands)

    return out_view.reshape(b, s, d)


def make_encoding(d_model: int, max_len: int = 5000, dtype=jnp.float32) -> jax.Array:
    """Reference buffer, identical to the PyTorch __init__ (used only for checking)."""
    pos = jnp.arange(max_len, dtype=dtype)[:, None]
    return jnp.tile(pos, (1, d_model)) / math.sqrt(d_model)


if __name__ == "__main__":
    batch, seq_len, d_model = 2, 8, 32
    max_len = 5000

    key = jax.random.PRNGKey(0)
    x = jax.random.normal(key, (batch, seq_len, d_model), dtype=jnp.float32)

    # Reference = exact PyTorch forward with the materialized buffer.
    encoding = make_encoding(d_model, max_len=max_len, dtype=jnp.float32)
    ref = x + encoding[:seq_len, :][None, :, :]

    # 1) Default path: no aliasing (safe when the caller does not donate x).
    out = jax.block_until_ready(simple_positional_encoding(x, max_len=max_len))
    assert out.shape == (batch, seq_len, d_model)
    assert out.dtype == x.dtype
    assert jnp.allclose(out, ref, atol=1e-5, rtol=1e-5), float(jnp.max(jnp.abs(out - ref)))

    # 2) In-place path: x is donated under jit, so input_output_aliases={0: 0}
    #    reuses x's HBM buffer without any defensive copy.  (x is consumed here.)
    pe_inplace = jax.jit(
        functools.partial(simple_positional_encoding, max_len=max_len, donate_x=True),
        donate_argnums=(0,))
    out2 = jax.block_until_ready(pe_inplace(x))
    assert out2.shape == (batch, seq_len, d_model)
    assert jnp.allclose(out2, ref, atol=1e-5, rtol=1e-5), float(jnp.max(jnp.abs(out2 - ref)))

    print("KERNEL_OK")
</pallas_src>

<mosaic_0001>
module attributes {stable_mosaic.version = 11 : i64} {
  func.func @_add_pe_kernel(%arg0: i32, %arg1: memref<4x128xf32, #tpu.memory_space<vmem>>, %arg2: memref<1x128xf32, #tpu.memory_space<vmem>>, %arg3: memref<4x128xf32, #tpu.memory_space<vmem>>) attributes {dimension_semantics = [#tpu.dimension_semantics<parallel>], iteration_bounds = array<i64: 1>, scalar_prefetch = 0 : i64, scratch_operands = 0 : i64, tpu.core_type = #tpu.core_type<tc>, window_params = [{transform_indices = @transform_0, window_bounds = array<i64: 4, 128>}, {pipeline_mode = #tpu.pipeline_mode<synchronous>, transform_indices = @transform_1, window_bounds = array<i64: 1, 128>}, {transform_indices = @transform_2, window_bounds = array<i64: 4, 128>}]} {
    %c4_i32 = arith.constant 4 : i32
    %0 = arith.muli %arg0, %c4_i32 : i32
    %1 = tpu.iota {dimensions = array<i32: 0>} : vector<4x1xi32>
    %2 = vector.broadcast %0 : i32 to vector<4x1xi32>
    %3 = arith.addi %2, %1 : vector<4x1xi32>
    %c2_i32 = arith.constant 2 : i32
    %c0_i32 = arith.constant 0 : i32
    %4 = arith.cmpi eq, %c2_i32, %c0_i32 : i32
    %c1_i32 = arith.constant 1 : i32
    %5 = arith.select %4, %c1_i32, %c2_i32 : i32
    %6 = vector.broadcast %5 : i32 to vector<4x1xi32>
    %7 = arith.remsi %3, %6 : vector<4x1xi32>
    %c0_i32_0 = arith.constant 0 : i32
    %8 = vector.broadcast %c0_i32_0 : i32 to vector<4x1xi32>
    %9 = arith.cmpi ne, %7, %8 : vector<4x1xi32>
    %c0_i32_1 = arith.constant 0 : i32
    %10 = vector.broadcast %c0_i32_1 : i32 to vector<4x1xi32>
    %11 = arith.cmpi slt, %7, %10 : vector<4x1xi32>
    %c0_i32_2 = arith.constant 0 : i32
    %12 = arith.cmpi slt, %5, %c0_i32_2 : i32
    %13 = vector.broadcast %12 : i1 to vector<4x1xi1>
    %14 = vector.broadcast %13 : vector<4x1xi1> to vector<4x1xi1>
    %15 = arith.xori %11, %14 : vector<4x1xi1>
    %16 = arith.andi %15, %9 : vector<4x1xi1>
    %17 = vector.broadcast %5 : i32 to vector<4x1xi32>
    %18 = arith.addi %7, %17 : vector<4x1xi32>
    %19 = arith.select %16, %18, %7 : vector<4x1xi1>, vector<4x1xi32>
    %20 = arith.sitofp %19 : vector<4x1xi32> to vector<4x1xf32>
    %cst = arith.constant 0.707106769 : f32
    %21 = vector.broadcast %cst : f32 to vector<4x1xf32>
    %22 = arith.mulf %20, %21 : vector<4x1xf32>
    %c0 = arith.constant 0 : index
    %c0_3 = arith.constant 0 : index
    %23 = vector.load %arg2[%c0, %c0_3] : memref<1x128xf32, #tpu.memory_space<vmem>>, vector<1x128xf32>
    %24 = vector.broadcast %22 : vector<4x1xf32> to vector<4x128xf32>
    %25 = vector.broadcast %23 : vector<1x128xf32> to vector<4x128xf32>
    %26 = arith.addf %24, %25 : vector<4x128xf32>
    %c0_4 = arith.constant 0 : index
    %c0_5 = arith.constant 0 : index
    %27 = vector.load %arg1[%c0_4, %c0_5] : memref<4x128xf32, #tpu.memory_space<vmem>>, vector<4x128xf32>
    %28 = arith.addf %27, %26 : vector<4x128xf32>
    %c0_6 = arith.constant 0 : index
    %c0_7 = arith.constant 0 : index
    %29 = vector.load %arg3[%c0_6, %c0_7] : memref<4x128xf32, #tpu.memory_space<vmem>>, vector<4x128xf32>
    tpu.vector_store %arg3[%c0_6, %c0_7], %28 {strides = array<i32>} : memref<4x128xf32, #tpu.memory_space<vmem>>, vector<4x128xf32>,
    return
  }
  func.func @transform_0(%arg0: i32) -> (i32, i32) {
    %c0_i32 = arith.constant 0 : i32
    %c0_i32_0 = arith.constant 0 : i32
    return %arg0, %c0_i32 : i32, i32
  }
  func.func @transform_1(%arg0: i32) -> (i32, i32) {
    %c0_i32 = arith.constant 0 : i32
    %c0_i32_0 = arith.constant 0 : i32
    %c0_i32_1 = arith.constant 0 : i32
    return %c0_i32, %c0_i32_0 : i32, i32
  }
  func.func @transform_2(%arg0: i32) -> (i32, i32) {
    %c0_i32 = arith.constant 0 : i32
    %c0_i32_0 = arith.constant 0 : i32
    return %arg0, %c0_i32 : i32, i32
  }
}

</mosaic_0001>

<bundles_post_ra>
// kernel: tpu_custom_call.1
= control target key start
LH: loop header
LB: loop body
LE: loop exit
PB: predicated region body
PF: predicated region fallthrough
CT: control target
= control target key end

     0   :  { %7 = vsyncpa [#allocation3], 0  ;;  %s142_s0 = inlined_call_operand.hbm [shape: f32[4,128], index: 0, kind: input, shape index: {}]   ;;  %s143_s1 = inlined_call_operand.vmem [shape: f32[1,128], index: 1, kind: input, shape index: {}]   ;;  %s144_s2 = inlined_call_operand.hbm [shape: f32[4,128], index: 2, kind: output, shape index: {}]  }
   0x1   :  { %8 = vsyncpa [#allocation4], 0  ;;  %s116_s9 = smov [#allocation2]  }
   0x2   :  { %s15_s10 = sshll.u32 %s116_s9, 4  ;;  %s16_s10 = int_to_ptr.vmem [resolvable:$true] %s15_s10 }
   0x3   :  { %s80_s11 = scalar_lea.vmem %s16_s10, 64  ;;  %p85_p1 = scmp.lt.s32.totalorder %s16_s10, %s16_s10 }
   0x4   :  { %p81_p0 = scmp.ne.s32.totalorder %s16_s10, %s80_s11  ;;  %p86_p2 = scmp.lt.s32.totalorder %s80_s11, %s80_s11 }
   0x6   :  { %p87_p3 = por %p86_p2, %p85_p1 }
   0x8   :  { %p88_p4 = pnand %p87_p3, %p81_p0 }
   0xa   :  { %91 = shalt.err (!%p88_p4)
}
   0xb   :  { %18 = dma.hbm_to_vmem [thread:$0]  %s142_s0, 64, %s16_s10, [#allocation3]  }
   0xc   :  { %112 = dma.done.wait [#allocation3], 64  }
   0xd   :  { %113 = vsyncadd [#allocation3], 4294967232  ;;  %v25_v0 = vlaneseq  ;;  %v69_v4 = vld [vmem:[%s143_s1] ss:$0 sm:$0xff]  ;;  %s117_s16 = smov [#allocation5]  }
   0xe   :  { %v51_v6 = vld [vmem:[#allocation2] sm:$0xf]  ;;  %s60_s17 = sshll.u32 %s117_s16, 4  ;;  %s61_s17 = int_to_ptr.vmem [resolvable:$true] %s60_s17 }
   0xf   :  { %v26_v1 = vshrl.u32 %v25_v0, 7  ;;  %s92_s18 = scalar_lea.vmem %s61_s17, 64  ;;  %p97_p6 = scmp.lt.s32.totalorder %s61_s17, %s61_s17 }
  0x10   :  { %p93_p5 = scmp.ne.s32.totalorder %s61_s17, %s92_s18  ;;  %p98_p7 = scmp.lt.s32.totalorder %s92_s18, %s92_s18 }
  0x11   :  { %v33_v2 = vand.u32 1, %v26_v1 }
  0x12   :  { %p99_p8 = por %p98_p7, %p97_p6 }
  0x13   :  { %v41_v3 = vcvt.s32.f32 %v33_v2 }
  0x14   :  { %p100_p9 = pnand %p99_p8, %p93_p5 }
  0x15   :  { %v42_v5 = vmul.f32 0.70710677, %v41_v3 }
  0x17   :  { %v50_v7 = vadd.f32 %v69_v4, %v42_v5 }
  0x19   :  { %v52_v8 = vadd.f32 %v51_v6, %v50_v7 }
  0x1b   :  { %53 = vst [vmem:[#allocation5] sm:$0xf] %v52_v8 }
  0x1c   :  { %103 = shalt.err (!%p100_p9)
}
  0x1d   :  { %63 = dma.vmem_to_hbm [thread:$0]  %s61_s17, 64, %s144_s2, [#allocation4]  }
  0x1e   :  { %114 = dma.done.wait [#allocation4], 64  }
  0x1f   :  { %115 = vsyncadd [#allocation4], 4294967232 }
  0x20   :  { %67 = vsyncpa [#allocation3], 1 }
  0x21   :  { %68 = vsyncpa [#allocation4], 1 }

</bundles_post_ra>
